<compile_context>
chip_gen: v7x
topology: tpu7x:2x2x1
jax: 0.10.0
libtpu: 0.0.40
codegen_flags: <defaults>
</compile_context>

<pallas_src>
import functools

import jax
import jax.numpy as jnp
import numpy as np
from jax import lax
from jax.experimental import pallas as pl
from jax.experimental.pallas import tpu as pltpu


def _convblock_kernel(xint_ref, xhalo_ref, w1r_ref, b1r_ref, w2f_ref, b2_ref,
                      w3_ref, b3_ref, out_ref, *, T, Wo, Cmid, Coutp):
    """One (image, H-tile) step of the fused bottleneck block.

    xint_ref : (M, Cin)         interior rows of this tile (lane-dense 2D)
    xhalo_ref: (2*Wo, Cin)      [row above tile ; row below tile]
    w1r_ref  : (Cin, Coutp+Cmid)  fused [w_right | w1] 1x1 weights  (resident)
    b1r_ref  : (1, Coutp+Cmid)  f32
    w2f_ref  : (3, 3*Cmid, Cmid)  3x3 weights grouped per kw, rows (kh, cin)
    b2_ref   : (1, Cmid)  f32
    w3_ref   : (Cmid, Coutp)
    b3_ref   : (1, Coutp) f32
    out_ref  : (M, Coutp) f32
    """
    M = xint_ref.shape[0]
    Mh = M + 2 * Wo
    wdt = w1r_ref.dtype                      # matmul operand dtype (f32 or bf16)

    # ---- assemble the (Mh, Cin) slab: [halo-top | interior | halo-bottom] ----
    xs = jnp.concatenate(
        [xhalo_ref[:Wo, :], xint_ref[...], xhalo_ref[Wo:, :]], axis=0)

    # ---- fused 1x1 convs sharing the same LHS: one MXU pass for [wr | w1] ----
    comb = jnp.dot(xs, w1r_ref[...],
                   preferred_element_type=jnp.float32) + b1r_ref[...]
    right = comb[Wo:Wo + M, :Coutp]                  # (M, Coutp)  residual branch
    y1 = jnp.maximum(comb[:, Coutp:], 0.0)           # (Mh, Cmid)  left branch

    # ---- zero the H-halo rows of y1 at image boundaries (== padding=1) ----
    t = pl.program_id(1)
    row = lax.broadcasted_iota(jnp.int32, (Mh, 1), 0)
    halo_invalid = jnp.logical_or(jnp.logical_and(t == 0, row < Wo),
                                  jnp.logical_and(t == T - 1, row >= Mh - Wo))
    y1 = jnp.where(halo_invalid, 0.0, y1)

    # ---- 3x3 conv (pad=1): per-kw W-shift (2 rolls total) + static kh slices --
    # The three kh taps of each W-shifted slab are sublane-aligned row slices at
    # offsets {0, Wo, 2*Wo}; roll wrap-around only hits W-edge-masked positions.
    w_col = row % Wo
    acc2 = jnp.zeros((M, Cmid), jnp.float32)
    for kw in range(3):
        dw = kw - 1
        if dw == 0:
            tap_w = y1
        else:
            shifted = pltpu.roll(y1, (-dw) % Mh, axis=0)
            if dw < 0:
                tap_w = jnp.where(w_col > 0, shifted, 0.0)
            else:
                tap_w = jnp.where(w_col < Wo - 1, shifted, 0.0)
        patches = jnp.concatenate(
            [tap_w[0:M], tap_w[Wo:Wo + M], tap_w[2 * Wo:2 * Wo + M]],
            axis=1)                                        # (M, 3*Cmid)
        acc2 = acc2 + jnp.dot(patches.astype(wdt), w2f_ref[kw],
                              preferred_element_type=jnp.float32)
    y2 = jnp.maximum(acc2 + b2_ref[...], 0.0)

    # ---- final 1x1 expand + residual add + ReLU ----
    left = jnp.dot(y2.astype(wdt), w3_ref[...],
                   preferred_element_type=jnp.float32) + b3_ref[...]
    out_ref[...] = jnp.maximum(left + right, 0.0)


def _vmem_capacity_bytes():
    """Per-core VMEM capacity; conservative fallback if the query fails."""
    try:
        cap = getattr(pltpu.get_tpu_info(), "vmem_capacity_bytes", None)
        if cap:
            return int(cap)
    except Exception:
        pass
    return 64 * 2 ** 20          # v7x per-TC size (most restrictive generation)


def _choose_h_tile(Ho, N, bytes_fn, budget):
    """Largest divisor TH of Ho whose estimated VMEM footprint fits the budget,
    preferring one that leaves >= 2 parallel grid steps (megacore / 2-TC)."""
    divs = sorted((d for d in range(1, Ho + 1) if Ho % d == 0), reverse=True)
    fitting = [d for d in divs if bytes_fn(d) <= budget]
    if not fitting:
        return 1
    best = fitting[0]
    if N * (Ho // best) < 2:
        for d in fitting:
            if N * (Ho // d) >= 2:
                return d
    return best


@functools.partial(jax.jit, static_argnames=("stride", "compute_dtype"))
def convblock_forward(x_nchw, params, stride, compute_dtype=jnp.bfloat16):
    """PyTorch-semantics forward.  x_nchw: (N, Cin, H, W) float32."""
    w1, b1, w2, b2, w3, b3, wr, br = params
    Cin, Cmid = w1.shape
    Cout = w3.shape[1]
    Coutp = ((Cout + 127) // 128) * 128          # lane-dense output channels

    cdt = compute_dtype
    itemsize = jnp.dtype(cdt).itemsize

    # ---- wrapper-side layout plumbing (XLA glue, no kernel relayouts) ----
    x = jnp.transpose(x_nchw, (0, 2, 3, 1))      # NCHW -> NHWC
    xs = x[:, ::stride, ::stride, :]             # stride of the 1x1 convs
    N, Ho, Wo = xs.shape[0], xs.shape[1], xs.shape[2]

    # ---- generation-aware tile sizing against the real VMEM budget ----
    budget = int(_vmem_capacity_bytes() * 0.75)  # ~48 MiB v7x, ~96 MiB v5e/v6e

    def tile_bytes(TH):
        M = TH * Wo
        Mh = M + 2 * Wo
        b = 2 * (M * Cin + 2 * Wo * Cin) * itemsize      # streamed inputs (x2 buf)
        b += 2 * M * Coutp * 4                           # streamed output (x2 buf)
        wbytes = (Cin * (Coutp + Cmid) + 9 * Cmid * Cmid + Cmid * Coutp) * itemsize
        wbytes += ((Coutp + Cmid) + Cmid + Coutp) * 4    # biases (f32)
        b += 2 * wbytes                                  # default double-buffered
        b += Mh * Cin * itemsize                         # xs slab
        b += Mh * (Coutp + Cmid) * 4                     # comb
        b += 2 * Mh * Cmid * 4                           # y1 + rolled tap
        b += M * 3 * Cmid * itemsize                     # per-kw patches
        b += 2 * M * Cmid * 4                            # acc2 / y2
        b += 2 * M * Coutp * 4                           # left / right
        return int(b * 1.25)                             # compiler-temp slack

    TH = _choose_h_tile(Ho, N, tile_bytes, budget)
    T = Ho // TH
    M = TH * Wo

    # TODO(synk): generalize to Wo % 8 != 0 (pad W) — 8-divisible row tiles are
    # required by the BlockSpec sublane rule when the grid has >1 step.
    assert N * T == 1 or (M % 8 == 0 and (2 * Wo) % 8 == 0), \
        "row tiles must be 8-divisible (use Wo % 8 == 0)"

    # Interior rows stream with NO duplicated HBM copy.
    xint2d = xs.reshape(N * Ho * Wo, Cin).astype(cdt)

    # Only the 2 halo rows per tile are duplicated (tiny): [row above; row below].
    zrow = jnp.zeros((N, 1, Wo, Cin), xs.dtype)
    above = jnp.concatenate([zrow, xs[:, TH - 1:(T - 1) * TH:TH]], axis=1)
    below = jnp.concatenate([xs[:, TH:T * TH:TH], zrow], axis=1)
    halo2d = jnp.stack([above, below], axis=2).reshape(N * T * 2 * Wo, Cin).astype(cdt)

    # ---- fused / padded / flattened weights (outside the kernel) ----
    pad = Coutp - Cout
    wr_p = jnp.pad(wr, ((0, 0), (0, pad)))
    br_p = jnp.pad(br, ((0, pad),))
    w3_p = jnp.pad(w3, ((0, 0), (0, pad)))
    b3_p = jnp.pad(b3, ((0, pad),))

    w1r = jnp.concatenate([wr_p, w1], axis=1).astype(cdt)        # (Cin, Coutp+Cmid)
    b1r = jnp.concatenate([br_p, b1]).reshape(1, Coutp + Cmid).astype(jnp.float32)
    w2f = jnp.transpose(w2, (1, 0, 2, 3)).reshape(3, 3 * Cmid, Cmid).astype(cdt)
    b2r = b2.reshape(1, Cmid).astype(jnp.float32)
    w3c = w3_p.astype(cdt)
    b3r = b3_p.reshape(1, Coutp).astype(jnp.float32)

    kernel = functools.partial(_convblock_kernel, T=T, Wo=Wo, Cmid=Cmid, Coutp=Coutp)

    flops = 2 * N * Ho * Wo * (Cin * (Coutp + Cmid) + 9 * Cmid * Cmid + Cmid * Coutp)
    bytes_accessed = int(xint2d.size * itemsize + halo2d.size * itemsize
                         + N * Ho * Wo * Coutp * 4
                         + (w1r.size + w2f.size + w3c.size) * itemsize
                         + 4 * (b1r.size + b2r.size + b3r.size))

    out2d = pl.pallas_call(
        kernel,
        out_shape=jax.ShapeDtypeStruct((N * Ho * Wo, Coutp), jnp.float32),
        grid=(N, T),
        in_specs=[
            pl.BlockSpec((M, Cin), lambda n, t: (n * T + t, 0)),        # streamed
            pl.BlockSpec((2 * Wo, Cin), lambda n, t: (n * T + t, 0)),   # streamed halo
            pl.BlockSpec((Cin, Coutp + Cmid), lambda n, t: (0, 0)),     # resident
            pl.BlockSpec((1, Coutp + Cmid), lambda n, t: (0, 0)),
            pl.BlockSpec((3, 3 * Cmid, Cmid), lambda n, t: (0, 0, 0)),
            pl.BlockSpec((1, Cmid), lambda n, t: (0, 0)),
            pl.BlockSpec((Cmid, Coutp), lambda n, t: (0, 0)),
            pl.BlockSpec((1, Coutp), lambda n, t: (0, 0)),
        ],
        out_specs=pl.BlockSpec((M, Coutp), lambda n, t: (n * T + t, 0)),
        compiler_params=pltpu.CompilerParams(
            dimension_semantics=("parallel", "parallel"),
            vmem_limit_bytes=budget,
        ),
        cost_estimate=pl.CostEstimate(flops=flops, transcendentals=0,
                                      bytes_accessed=bytes_accessed),
    )(xint2d, halo2d, w1r, b1r, w2f, b2r, w3c, b3r)

    # (N*Ho*Wo, Coutp) -> strip channel padding -> NHWC -> NCHW
    out = out2d[:, :Cout].reshape(N, Ho, Wo, Cout)
    return jnp.transpose(out, (0, 3, 1, 2))


def reference_forward(x_nchw, params, stride):
    """Pure-JAX reference using lax.conv (for correctness check)."""
    w1, b1, w2, b2, w3, b3, wr, br = params
    dn = ("NHWC", "HWIO", "NHWC")
    x = jnp.transpose(x_nchw, (0, 2, 3, 1))

    def conv(inp, w_hwio, b, strides, padding):
        y = lax.conv_general_dilated(inp, w_hwio, strides, padding,
                                     dimension_numbers=dn)
        return y + b.reshape(1, 1, 1, -1)

    Cin, Cmid = w1.shape
    Cout = w3.shape[1]
    y = conv(x, w1.reshape(1, 1, Cin, Cmid), b1, (stride, stride), "VALID")
    y = jnp.maximum(y, 0.0)
    y = conv(y, w2, b2, (1, 1), [(1, 1), (1, 1)])
    y = jnp.maximum(y, 0.0)
    left = conv(y, w3.reshape(1, 1, Cmid, Cout), b3, (1, 1), "VALID")
    right = conv(x, wr.reshape(1, 1, Cin, Cout), br, (stride, stride), "VALID")
    out = jnp.maximum(left + right, 0.0)
    return jnp.transpose(out, (0, 3, 1, 2))


def init_params(key, in_channels, out_channels):
    """Deterministic synthetic parameters in matmul-friendly layouts:
    (Cin, Cout) for 1x1 convs and (kh, kw, Cin, Cout) for the 3x3."""
    Cmid = out_channels
    Cout = 4 * out_channels
    ks = jax.random.split(key, 8)
    w1 = 0.2 * jax.random.normal(ks[0], (in_channels, Cmid), jnp.float32)
    b1 = 0.1 * jax.random.normal(ks[1], (Cmid,), jnp.float32)
    w2 = 0.2 * jax.random.normal(ks[2], (3, 3, Cmid, Cmid), jnp.float32)
    b2 = 0.1 * jax.random.normal(ks[3], (Cmid,), jnp.float32)
    w3 = 0.2 * jax.random.normal(ks[4], (Cmid, Cout), jnp.float32)
    b3 = 0.1 * jax.random.normal(ks[5], (Cout,), jnp.float32)
    wr = 0.2 * jax.random.normal(ks[6], (in_channels, Cout), jnp.float32)
    br = 0.1 * jax.random.normal(ks[7], (Cout,), jnp.float32)
    return (w1, b1, w2, b2, w3, b3, wr, br)


if __name__ == "__main__":
    key = jax.random.PRNGKey(0)
    k_x, k_p = jax.random.split(key)

    # Small shapes consistent with the module: N=2, Cin=4, H=W=16,
    # out_channels=4 (final channels = 16), stride=2.
    N, Cin, H, W = 2, 4, 16, 16
    out_channels = 4
    stride = 2

    x = jax.random.normal(k_x, (N, Cin, H, W), jnp.float32)
    params = init_params(k_p, Cin, out_channels)

    ref = jax.block_until_ready(reference_forward(x, params, stride))

    # f32 operand path: exact check against the lax.conv reference.
    out_f32 = jax.block_until_ready(
        convblock_forward(x, params, stride, compute_dtype=jnp.float32))
    assert out_f32.shape == (N, 4 * out_channels, H // stride, W // stride), out_f32.shape
    np.testing.assert_allclose(np.asarray(out_f32), np.asarray(ref),
                               atol=1e-4, rtol=1e-4)

    # Default bf16-operand path (f32 accumulation): loose tolerance.
    out_bf16 = jax.block_until_ready(convblock_forward(x, params, stride))
    np.testing.assert_allclose(np.asarray(out_bf16), np.asarray(ref),
                               atol=1e-1, rtol=1e-1)

    print("KERNEL_OK")
</pallas_src>

<mosaic_0001>
module attributes {stable_mosaic.version = 11 : i64} {
  func.func @_convblock_kernel(%arg0: i32, %arg1: i32, %arg2: memref<64x4xf32, #tpu.memory_space<vmem>>, %arg3: memref<16x4xf32, #tpu.memory_space<vmem>>, %arg4: memref<4x132xf32, #tpu.memory_space<vmem>>, %arg5: memref<1x132xf32, #tpu.memory_space<vmem>>, %arg6: memref<3x12x4xf32, #tpu.memory_space<vmem>>, %arg7: memref<1x4xf32, #tpu.memory_space<vmem>>, %arg8: memref<4x128xf32, #tpu.memory_space<vmem>>, %arg9: memref<1x128xf32, #tpu.memory_space<vmem>>, %arg10: memref<64x128xf32, #tpu.memory_space<vmem>>) attributes {dimension_semantics = [#tpu.dimension_semantics<parallel>, #tpu.dimension_semantics<parallel>], iteration_bounds = array<i64: 2, 1>, scalar_prefetch = 0 : i64, scratch_operands = 0 : i64, tpu.core_type = #tpu.core_type<tc>, window_params = [{transform_indices = @transform_0, window_bounds = array<i64: 64, 4>}, {transform_indices = @transform_1, window_bounds = array<i64: 16, 4>}, {pipeline_mode = #tpu.pipeline_mode<synchronous>, transform_indices = @transform_2, window_bounds = array<i64: 4, 132>}, {pipeline_mode = #tpu.pipeline_mode<synchronous>, transform_indices = @transform_3, window_bounds = array<i64: 1, 132>}, {pipeline_mode = #tpu.pipeline_mode<synchronous>, transform_indices = @transform_4, window_bounds = array<i64: 3, 12, 4>}, {pipeline_mode = #tpu.pipeline_mode<synchronous>, transform_indices = @transform_5, window_bounds = array<i64: 1, 4>}, {pipeline_mode = #tpu.pipeline_mode<synchronous>, transform_indices = @transform_6, window_bounds = array<i64: 4, 128>}, {pipeline_mode = #tpu.pipeline_mode<synchronous>, transform_indices = @transform_7, window_bounds = array<i64: 1, 128>}, {transform_indices = @transform_8, window_bounds = array<i64: 64, 128>}]} {
    %c0 = arith.constant 0 : index
    %c0_0 = arith.constant 0 : index
    %0 = vector.load %arg3[%c0, %c0_0] : memref<16x4xf32, #tpu.memory_space<vmem>>, vector<8x4xf32>
    %c0_1 = arith.constant 0 : index
    %c0_2 = arith.constant 0 : index
    %1 = vector.load %arg2[%c0_1, %c0_2] : memref<64x4xf32, #tpu.memory_space<vmem>>, vector<64x4xf32>
    %c8 = arith.constant 8 : index
    %c0_3 = arith.constant 0 : index
    %2 = vector.load %arg3[%c8, %c0_3] : memref<16x4xf32, #tpu.memory_space<vmem>>, vector<8x4xf32>
    %3 = tpu.concatenate %0, %1, %2 in 0 : vector<8x4xf32>, vector<64x4xf32>, vector<8x4xf32> -> vector<80x4xf32>
    %c0_4 = arith.constant 0 : index
    %c0_5 = arith.constant 0 : index
    %4 = vector.load %arg4[%c0_4, %c0_5] : memref<4x132xf32, #tpu.memory_space<vmem>>, vector<4x132xf32>
    %cst = arith.constant dense<0.000000e+00> : vector<80x132xf32>
    %5 = tpu.matmul %3, %4, %cst {dimension_numbers = #tpu.dot_dimension_numbers<[1], [0], [0], [1], [0, 0, 1, 1], [], []>} : vector<80x4xf32>, vector<4x132xf32>, vector<80x132xf32> -> vector<80x132xf32>
    %c0_6 = arith.constant 0 : index
    %c0_7 = arith.constant 0 : index
    %6 = vector.load %arg5[%c0_6, %c0_7] : memref<1x132xf32, #tpu.memory_space<vmem>>, vector<1x132xf32>
    %7 = vector.broadcast %6 : vector<1x132xf32> to vector<80x132xf32>
    %8 = arith.addf %5, %7 : vector<80x132xf32>
    %9 = vector.extract_strided_slice %8 {offsets = [8, 0], sizes = [64, 128], strides = [1, 1]} : vector<80x132xf32> to vector<64x128xf32>
    %10 = vector.extract_strided_slice %8 {offsets = [0, 128], sizes = [80, 4], strides = [1, 1]} : vector<80x132xf32> to vector<80x4xf32>
    %cst_8 = arith.constant 0.000000e+00 : f32
    %11 = vector.broadcast %cst_8 : f32 to vector<80x4xf32>
    %12 = arith.maximumf %10, %11 : vector<80x4xf32>
    %13 = tpu.iota {dimensions = array<i32: 0>} : vector<80x1xi32>
    %c0_i32 = arith.constant 0 : i32
    %14 = arith.cmpi eq, %arg1, %c0_i32 : i32
    %c8_i32 = arith.constant 8 : i32
    %15 = vector.broadcast %c8_i32 : i32 to vector<80x1xi32>
    %16 = arith.cmpi slt, %13, %15 : vector<80x1xi32>
    %17 = vector.broadcast %14 : i1 to vector<80x1xi1>
    %18 = arith.andi %17, %16 : vector<80x1xi1>
    %c0_i32_9 = arith.constant 0 : i32
    %19 = arith.cmpi eq, %arg1, %c0_i32_9 : i32
    %c72_i32 = arith.constant 72 : i32
    %20 = vector.broadcast %c72_i32 : i32 to vector<80x1xi32>
    %21 = arith.cmpi sge, %13, %20 : vector<80x1xi32>
    %22 = vector.broadcast %19 : i1 to vector<80x1xi1>
    %23 = arith.andi %22, %21 : vector<80x1xi1>
    %24 = arith.ori %18, %23 : vector<80x1xi1>
    %cst_10 = arith.constant 0.000000e+00 : f32
    %25 = vector.shape_cast %24 : vector<80x1xi1> to vector<80x1xi1>
    %26 = vector.broadcast %25 : vector<80x1xi1> to vector<80x4xi1>
    %27 = vector.broadcast %cst_10 : f32 to vector<80x4xf32>
    %28 = arith.select %26, %27, %12 : vector<80x4xi1>, vector<80x4xf32>
    %c8_i32_11 = arith.constant 8 : i32
    %c0_i32_12 = arith.constant 0 : i32
    %29 = arith.cmpi eq, %c8_i32_11, %c0_i32_12 : i32
    %c1_i32 = arith.constant 1 : i32
    %30 = arith.select %29, %c1_i32, %c8_i32_11 : i32
    %31 = vector.broadcast %30 : i32 to vector<80x1xi32>
    %32 = arith.remsi %13, %31 : vector<80x1xi32>
    %c0_i32_13 = arith.constant 0 : i32
    %33 = vector.broadcast %c0_i32_13 : i32 to vector<80x1xi32>
    %34 = arith.cmpi ne, %32, %33 : vector<80x1xi32>
    %c0_i32_14 = arith.constant 0 : i32
    %35 = vector.broadcast %c0_i32_14 : i32 to vector<80x1xi32>
    %36 = arith.cmpi slt, %32, %35 : vector<80x1xi32>
    %c0_i32_15 = arith.constant 0 : i32
    %37 = arith.cmpi slt, %30, %c0_i32_15 : i32
    %38 = vector.broadcast %37 : i1 to vector<80x1xi1>
    %39 = vector.broadcast %38 : vector<80x1xi1> to vector<80x1xi1>
    %40 = arith.xori %36, %39 : vector<80x1xi1>
    %41 = arith.andi %40, %34 : vector<80x1xi1>
    %42 = vector.broadcast %30 : i32 to vector<80x1xi32>
    %43 = arith.addi %32, %42 : vector<80x1xi32>
    %44 = arith.select %41, %43, %32 : vector<80x1xi1>, vector<80x1xi32>
    %cst_16 = arith.constant 0.000000e+00 : f32
    %45 = vector.broadcast %cst_16 : f32 to vector<64x4xf32>
    %c1_i32_17 = arith.constant 1 : i32
    %46 = tpu.dynamic_rotate %28 by %c1_i32_17 dim 0 : vector<80x4xf32>, i32 -> vector<80x4xf32>
    %c0_i32_18 = arith.constant 0 : i32
    %47 = vector.broadcast %c0_i32_18 : i32 to vector<80x1xi32>
    %48 = arith.cmpi sgt, %44, %47 : vector<80x1xi32>
    %cst_19 = arith.constant 0.000000e+00 : f32
    %49 = vector.shape_cast %48 : vector<80x1xi1> to vector<80x1xi1>
    %50 = vector.broadcast %49 : vector<80x1xi1> to vector<80x4xi1>
    %51 = vector.broadcast %cst_19 : f32 to vector<80x4xf32>
    %52 = arith.select %50, %46, %51 : vector<80x4xi1>, vector<80x4xf32>
    %53 = vector.extract_strided_slice %52 {offsets = [0, 0], sizes = [64, 4], strides = [1, 1]} : vector<80x4xf32> to vector<64x4xf32>
    %54 = vector.extract_strided_slice %52 {offsets = [8, 0], sizes = [64, 4], strides = [1, 1]} : vector<80x4xf32> to vector<64x4xf32>
    %55 = vector.extract_strided_slice %52 {offsets = [16, 0], sizes = [64, 4], strides = [1, 1]} : vector<80x4xf32> to vector<64x4xf32>
    %56 = tpu.concatenate %53, %54, %55 in 1 : vector<64x4xf32>, vector<64x4xf32>, vector<64x4xf32> -> vector<64x12xf32>
    %c0_20 = arith.constant 0 : index
    %c0_21 = arith.constant 0 : index
    %c0_22 = arith.constant 0 : index
    %57 = vector.load %arg6[%c0_20, %c0_21, %c0_22] : memref<3x12x4xf32, #tpu.memory_space<vmem>>, vector<1x12x4xf32>
    %58 = vector.shape_cast %57 : vector<1x12x4xf32> to vector<12x4xf32>
    %cst_23 = arith.constant dense<0.000000e+00> : vector<64x4xf32>
    %59 = tpu.matmul %56, %58, %cst_23 {dimension_numbers = #tpu.dot_dimension_numbers<[1], [0], [0], [1], [0, 0, 1, 1], [], []>} : vector<64x12xf32>, vector<12x4xf32>, vector<64x4xf32> -> vector<64x4xf32>
    %60 = arith.addf %45, %59 : vector<64x4xf32>
    %61 = vector.extract_strided_slice %28 {offsets = [0, 0], sizes = [64, 4], strides = [1, 1]} : vector<80x4xf32> to vector<64x4xf32>
    %62 = vector.extract_strided_slice %28 {offsets = [8, 0], sizes = [64, 4], strides = [1, 1]} : vector<80x4xf32> to vector<64x4xf32>
    %63 = vector.extract_strided_slice %28 {offsets = [16, 0], sizes = [64, 4], strides = [1, 1]} : vector<80x4xf32> to vector<64x4xf32>
    %64 = tpu.concatenate %61, %62, %63 in 1 : vector<64x4xf32>, vector<64x4xf32>, vector<64x4xf32> -> vector<64x12xf32>
    %c1 = arith.constant 1 : index
    %c0_24 = arith.constant 0 : index
    %c0_25 = arith.constant 0 : index
    %65 = vector.load %arg6[%c1, %c0_24, %c0_25] : memref<3x12x4xf32, #tpu.memory_space<vmem>>, vector<1x12x4xf32>
    %66 = vector.shape_cast %65 : vector<1x12x4xf32> to vector<12x4xf32>
    %cst_26 = arith.constant dense<0.000000e+00> : vector<64x4xf32>
    %67 = tpu.matmul %64, %66, %cst_26 {dimension_numbers = #tpu.dot_dimension_numbers<[1], [0], [0], [1], [0, 0, 1, 1], [], []>} : vector<64x12xf32>, vector<12x4xf32>, vector<64x4xf32> -> vector<64x4xf32>
    %68 = arith.addf %60, %67 : vector<64x4xf32>
    %c79_i32 = arith.constant 79 : i32
    %69 = tpu.dynamic_rotate %28 by %c79_i32 dim 0 : vector<80x4xf32>, i32 -> vector<80x4xf32>
    %c7_i32 = arith.constant 7 : i32
    %70 = vector.broadcast %c7_i32 : i32 to vector<80x1xi32>
    %71 = arith.cmpi slt, %44, %70 : vector<80x1xi32>
    %cst_27 = arith.constant 0.000000e+00 : f32
    %72 = vector.shape_cast %71 : vector<80x1xi1> to vector<80x1xi1>
    %73 = vector.broadcast %72 : vector<80x1xi1> to vector<80x4xi1>
    %74 = vector.broadcast %cst_27 : f32 to vector<80x4xf32>
    %75 = arith.select %73, %69, %74 : vector<80x4xi1>, vector<80x4xf32>
    %76 = vector.extract_strided_slice %75 {offsets = [0, 0], sizes = [64, 4], strides = [1, 1]} : vector<80x4xf32> to vector<64x4xf32>
    %77 = vector.extract_strided_slice %75 {offsets = [8, 0], sizes = [64, 4], strides = [1, 1]} : vector<80x4xf32> to vector<64x4xf32>
    %78 = vector.extract_strided_slice %75 {offsets = [16, 0], sizes = [64, 4], strides = [1, 1]} : vector<80x4xf32> to vector<64x4xf32>
    %79 = tpu.concatenate %76, %77, %78 in 1 : vector<64x4xf32>, vector<64x4xf32>, vector<64x4xf32> -> vector<64x12xf32>
    %c2 = arith.constant 2 : index
    %c0_28 = arith.constant 0 : index
    %c0_29 = arith.constant 0 : index
    %80 = vector.load %arg6[%c2, %c0_28, %c0_29] : memref<3x12x4xf32, #tpu.memory_space<vmem>>, vector<1x12x4xf32>
    %81 = vector.shape_cast %80 : vector<1x12x4xf32> to vector<12x4xf32>
    %cst_30 = arith.constant dense<0.000000e+00> : vector<64x4xf32>
    %82 = tpu.matmul %79, %81, %cst_30 {dimension_numbers = #tpu.dot_dimension_numbers<[1], [0], [0], [1], [0, 0, 1, 1], [], []>} : vector<64x12xf32>, vector<12x4xf32>, vector<64x4xf32> -> vector<64x4xf32>
    %83 = arith.addf %68, %82 : vector<64x4xf32>
    %c0_31 = arith.constant 0 : index
    %c0_32 = arith.constant 0 : index
    %84 = vector.load %arg7[%c0_31, %c0_32] : memref<1x4xf32, #tpu.memory_space<vmem>>, vector<1x4xf32>
    %85 = vector.broadcast %84 : vector<1x4xf32> to vector<64x4xf32>
    %86 = arith.addf %83, %85 : vector<64x4xf32>
    %cst_33 = arith.constant 0.000000e+00 : f32
    %87 = vector.broadcast %cst_33 : f32 to vector<64x4xf32>
    %88 = arith.maximumf %86, %87 : vector<64x4xf32>
    %c0_34 = arith.constant 0 : index
    %c0_35 = arith.constant 0 : index
    %89 = vector.load %arg8[%c0_34, %c0_35] : memref<4x128xf32, #tpu.memory_space<vmem>>, vector<4x128xf32>
    %cst_36 = arith.constant dense<0.000000e+00> : vector<64x128xf32>
    %90 = tpu.matmul %88, %89, %cst_36 {dimension_numbers = #tpu.dot_dimension_numbers<[1], [0], [0], [1], [0, 0, 1, 1], [], []>} : vector<64x4xf32>, vector<4x128xf32>, vector<64x128xf32> -> vector<64x128xf32>
    %c0_37 = arith.constant 0 : index
    %c0_38 = arith.constant 0 : index
    %91 = vector.load %arg9[%c0_37, %c0_38] : memref<1x128xf32, #tpu.memory_space<vmem>>, vector<1x128xf32>
    %92 = vector.broadcast %91 : vector<1x128xf32> to vector<64x128xf32>
    %93 = arith.addf %90, %92 : vector<64x128xf32>
    %94 = arith.addf %93, %9 : vector<64x128xf32>
    %cst_39 = arith.constant 0.000000e+00 : f32
    %95 = vector.broadcast %cst_39 : f32 to vector<64x128xf32>
    %96 = arith.maximumf %94, %95 : vector<64x128xf32>
    %c0_40 = arith.constant 0 : index
    %c0_41 = arith.constant 0 : index
    %97 = vector.load %arg10[%c0_40, %c0_41] : memref<64x128xf32, #tpu.memory_space<vmem>>, vector<64x128xf32>
    tpu.vector_store %arg10[%c0_40, %c0_41], %96 {strides = array<i32>} : memref<64x128xf32, #tpu.memory_space<vmem>>, vector<64x128xf32>,
    return
  }
  func.func @transform_0(%arg0: i32, %arg1: i32) -> (i32, i32) {
    %c1_i32 = arith.constant 1 : i32
    %0 = arith.muli %arg0, %c1_i32 : i32
    %1 = arith.addi %0, %arg1 : i32
    %c0_i32 = arith.constant 0 : i32
    %c0_i32_0 = arith.constant 0 : i32
    return %1, %c0_i32 : i32, i32
  }
  func.func @transform_1(%arg0: i32, %arg1: i32) -> (i32, i32) {
    %c1_i32 = arith.constant 1 : i32
    %0 = arith.muli %arg0, %c1_i32 : i32
    %1 = arith.addi %0, %arg1 : i32
    %c0_i32 = arith.constant 0 : i32
    %c0_i32_0 = arith.constant 0 : i32
    return %1, %c0_i32 : i32, i32
  }
  func.func @transform_2(%arg0: i32, %arg1: i32) -> (i32, i32) {
    %c0_i32 = arith.constant 0 : i32
    %c0_i32_0 = arith.constant 0 : i32
    %c0_i32_1 = arith.constant 0 : i32
    return %c0_i32, %c0_i32_0 : i32, i32
  }
  func.func @transform_3(%arg0: i32, %arg1: i32) -> (i32, i32) {
    %c0_i32 = arith.constant 0 : i32
    %c0_i32_0 = arith.constant 0 : i32
    %c0_i32_1 = arith.constant 0 : i32
    return %c0_i32, %c0_i32_0 : i32, i32
  }
  func.func @transform_4(%arg0: i32, %arg1: i32) -> (i32, i32, i32) {
    %c0_i32 = arith.constant 0 : i32
    %c0_i32_0 = arith.constant 0 : i32
    %c0_i32_1 = arith.constant 0 : i32
    %c0_i32_2 = arith.constant 0 : i32
    return %c0_i32, %c0_i32_0, %c0_i32_1 : i32, i32, i32
  }
  func.func @transform_5(%arg0: i32, %arg1: i32) -> (i32, i32) {
    %c0_i32 = arith.constant 0 : i32
    %c0_i32_0 = arith.constant 0 : i32
    %c0_i32_1 = arith.constant 0 : i32
    return %c0_i32, %c0_i32_0 : i32, i32
  }
  func.func @transform_6(%arg0: i32, %arg1: i32) -> (i32, i32) {
    %c0_i32 = arith.constant 0 : i32
    %c0_i32_0 = arith.constant 0 : i32
    %c0_i32_1 = arith.constant 0 : i32
    return %c0_i32, %c0_i32_0 : i32, i32
  }
  func.func @transform_7(%arg0: i32, %arg1: i32) -> (i32, i32) {
    %c0_i32 = arith.constant 0 : i32
    %c0_i32_0 = arith.constant 0 : i32
    %c0_i32_1 = arith.constant 0 : i32
    return %c0_i32, %c0_i32_0 : i32, i32
  }
  func.func @transform_8(%arg0: i32, %arg1: i32) -> (i32, i32) {
    %c1_i32 = arith.constant 1 : i32
    %0 = arith.muli %arg0, %c1_i32 : i32
    %1 = arith.addi %0, %arg1 : i32
    %c0_i32 = arith.constant 0 : i32
    %c0_i32_0 = arith.constant 0 : i32
    return %1, %c0_i32 : i32, i32
  }
}

</mosaic_0001>

<bundles_post_ra>
// kernel: convblock_forward.1
= control target key start
LH: loop header
LB: loop body
LE: loop exit
PB: predicated region body
PF: predicated region fallthrough
CT: control target
= control target key end

     0   :  { %13 = vsyncpa [#allocation3], 0  ;;  %s2872_s0 = inlined_call_operand.vmem [shape: f32[128,4], index: 0, kind: input, shape index: {}]   ;;  %s2873_s1 = inlined_call_operand.vmem [shape: f32[32,4], index: 1, kind: input, shape index: {}]   ;;  %s2874_s2 = inlined_call_operand.vmem [shape: f32[4,132], index: 2, kind: input, shape index: {}]   ;;  %s2875_s3 = inlined_call_operand.vmem [shape: f32[1,132], index: 3, kind: input, shape index: {}]   ;;  %s2876_s4 = inlined_call_operand.vmem [shape: f32[3,12,4], index: 4, kind: input, shape index: {}]   ;;  %s2877_s5 = inlined_call_operand.vmem [shape: f32[1,4], index: 5, kind: input, shape index: {}]   ;;  %s2878_s6 = inlined_call_operand.vmem [shape: f32[4,128], index: 6, kind: input, shape index: {}]   ;;  %s2879_s7 = inlined_call_operand.vmem [shape: f32[1,128], index: 7, kind: input, shape index: {}]   ;;  %s2880_s8 = inlined_call_operand.hbm [shape: f32[128,128], index: 8, kind: output, shape index: {}]  }
   0x1   :  { %15 = vsyncpa [#allocation3 + $0x1], 0  ;;  %s2206_s27 = smov 0   ;;  %s2208_s28 = smov 0  }
   0x2   :  { %s2210_s29 = smov 0   ;;  %s2212_s30 = smov 0  }
   0x3   :  { %s2214_s9 = smov 0   ;;  %s2216_s10 = smov 0  }
   0x4 LB: > { %s1807_s11 = sadd.s32 4294967295, %s2153_s10   ;;  %s1808_s12 = sadd.s32 4294967294, %s2153_s10   ;;  %s2153_s10 = sphi %s2216_s10, %s21_s10   ;;  %s2149_s9 = sphi %s2214_s9, %s2899_s9   ;;  %s2145_s30 = sphi %s2212_s30, %s2898_s30   ;;  %s2141_s29 = sphi %s2210_s29, %s2897_s29   ;;  %s2137_s28 = sphi %s2208_s28, %s2896_s28   ;;  %s2133_s27 = sphi %s2206_s27, %s2895_s27  }
   0x5   : > { %s33_s13 = sadd.s32 1, %s2149_s9  ;;  %s224_s14 = sadd.s32 1, %s2141_s29 }
   0x6   : > { %p35_p0 = scmp.ge.s32.totalorder %s33_s13, 2  ;;  %p234_p1 = scmp.ne.s32.totalorder %s2141_s29, %s2137_s28 }
   0x7   : > { %p235_p2 = scmp.eq.s32.totalorder %s1807_s11, 1  ;;  %p240_p3 = scmp.ne.s32.totalorder %s2137_s28, %s2133_s27 }
   0x8   : > { %s2901_s13 = smov (%p35_p0, %s33_s13), 0  ;;  %p241_p5 = scmp.eq.s32.totalorder %s1808_s12, 1 }
   0x9   : > { %p2246_p4 = por %p235_p2, %p234_p1  ;;  %s221_s16 = ssub.s32 %s2149_s9, %s2901_s13 }
   0xa   : > { %p1811_p6 = scmp.ge.s32.totalorder %s2153_s10, 1  ;;  %p222_p7 = scmp.eq.s32.totalorder %s221_s16, 0 }
   0xb   : > { %p2253_p8 = por %p241_p5, %p240_p3  ;;  %p299_p9 = scmp.lt.s32.totalorder %s2153_s10, 3 }
   0xc   : > { %s2259_s18 = scalar_select %p222_p7, %s2141_s29, %s224_s14  }
   0xd   : > { %p300_p10 = pnand %p1811_p6, %p299_p9 }
   0xe   : > { %v368_v0 = vld [vmem:[%s2874_s2] sm:$0xff] (!%p300_p10)  ;;  %vm414_vm0 = vcmask (!%p300_p10), 1043456   ;;  %s1815_s21 = sshll.u32 (!%p300_p10), %s2145_s30, 1  ;;  %s1813_s22 = sshll.u32 (!%p300_p10), %s2145_s30, 3  ;;  %v2155_v2 = vmov (!%p300_p10), 0.0   ;;  %vm383_vm1 = vcmask (!%p300_p10), 31744   ;;  %v371_v12 = vlaneseq (!%p300_p10) }
   0xf   : > { %303 = sbr.rel (%p300_p10) target bundleno = 908 (0x38c), region = 52  ;;  %v382_v1 = vcombine.high (!%p300_p10), %v368_v0, %v368_v0  ;;  %483 = vmatprep.mubr.f32.mxu0 (!%p300_p10), %v2155_v2  ;;  %p350_p11 = scmp.lt.s32.totalorder (!%p300_p10), %s1815_s21, 3  ;;  %536 = vmatprep.mubr.f32.mxu1 (!%p300_p10), %v2155_v2  ;;  %v369_v14 = vld [vmem:[%s2875_s3] sm:$0x3] (!%p300_p10)  ;;  %v1829_v18 = vld [vmem:[%s2876_s4 + $0x10] sm:$0xff] (!%p300_p10)  ;;  %vm2157_vm2 = vmmov (!%p300_p10), 1  }
  0x10   : > { %p342_p12 = scmp.lt.s32.totalorder (!%p300_p10), %s1813_s22, 15  ;;  %v2298_v13 = vshrl.u32 (!%p300_p10), %v371_v12, 7  ;;  %v1830_v19 = vld [vmem:[%s2876_s4 + $0x18] sm:$0xf] (!%p300_p10)  ;;  %vm2318_vm3 = vmpackc.low (!%p300_p10), %vm414_vm0, %vm2157_vm2  ;;  %v2326_v27 = vrot.slane (!%p300_p10), %v2155_v2, 7  ;;  %v2347_v37 = vrot.slane (!%p300_p10), %v2155_v2, 1 }
  0x11   : > { %1817 = vmatprep.subr.msk.mxu0 (!%p300_p10), %vm414_vm0, %v382_v1  ;;  %1996 = vmatprep.subr.msk.mxu1 (!%p300_p10), %vm414_vm0, %v382_v1  ;;  %v1978_v22 = vpack.c.bf16 (!%p300_p10), %v1830_v19, %v1829_v18  ;;  %s337_s12 = sand.u32 (!%p300_p10), 1, %s2137_s28   ;;  %s2159_s14 = smov (!%p300_p10), [#allocation2]  }
  0x12   : > { %1818 = vmatpush1.msk.msra.mxu0 (!%p300_p10), %vm414_vm0, %v368_v0  ;;  %1997 = vmatpush1.msk.msra.mxu1 (!%p300_p10), %vm414_vm0, %v368_v0  ;;  %v373_v15 = vsub.s32 (!%p300_p10), 0, %v2298_v13  ;;  %v377_v17 = vsub.s32 (!%p300_p10), 1, %v2298_v13  ;;  %v651_v25 = vand.u32 (!%p300_p10), 7, %v2298_v13  ;;  %v554_v33 = vadd.s32 (!%p300_p10), 8, %v2298_v13  ;;  %s1812_s19 = sshll.u32 (!%p300_p10), %s337_s12, 6 }
  0x13   : > { %1980 = vmatprep.subr.msk.bf16.mxu1 (!%p300_p10), %vm2318_vm3, %v1978_v22  ;;  %v2353_v41 = vadd.s32 (!%p300_p10), 16, %v2298_v13  ;;  %vm1255_vm5 = vcmp.lt.s32.totalorder (!%p300_p10), %v2298_v13, 7  ;;  %vm777_vm7 = vcmp.lt.s32.totalorder (!%p300_p10), %v2298_v13, 1  ;;  %v2403_v62 = vadd.s32 (!%p300_p10), 24, %v2298_v13  ;;  %s2798_s20 = scalar_lea.vmem (!%p300_p10), [#allocation2], %s1812_s19 }
  0x14   : > { %v2304_v16 = vrot.slane (!%p300_p10), %v369_v14, %v373_v15  ;;  %v2323_v26 = vrot.slane (!%p300_p10), %v369_v14, %v377_v17  ;;  %vm2332_vm4 = vcmp.gt.s32.totalorder (!%p300_p10), %v651_v25, 0  ;;  %v658_v40 = vand.u32 (!%p300_p10), 7, %v554_v33 }
  0x15   : > { %v818_v30 = vsel (!%p300_p10), %vm2332_vm4, %v2326_v27, 0.0  ;;  %vm2361_vm6 = vcmp.lt.s32.totalorder (!%p300_p10), %v651_v25, 7  ;;  %v665_v54 = vand.u32 (!%p300_p10), 7, %v2353_v41  ;;  %v2437_v15 = vadd.s32 (!%p300_p10), 32, %v2298_v13 }
  0x16   : > { %s2903_s21 = smov (!%p350_p11, %s1815_s21), 3  ;;  %s2905_s22 = smov (!%p342_p12, %s1813_s22), 15  ;;  %vm789_vm8 = vcmp.gt.s32.totalorder %v658_v40, 0  ;;  %vm1267_vm10 = vcmp.lt.s32.totalorder %v658_v40, 7  ;;  %v561_v18 = vadd.s32 64, %v2298_v13  ;;  %v2459_v33 = vadd.s32 56, %v2298_v13 }
  0x17   : > { %s1816_s23 = sshll.u32 %s2903_s21, 3  ;;  %s1814_s11 = sshll.u32 %s2905_s22, 3  ;;  %vm790_vm9 = vcmp.gt.s32.totalorder %v665_v54, 0  ;;  %vm1268_vm12 = vcmp.lt.s32.totalorder %v665_v54, 7 }
  0x18   : > { %s2275_s26 = scalar_lea.vmem %s2873_s1, %s1816_s23  ;;  %s345_s16 = scalar_lea.vmem %s2872_s0, %s1814_s11  ;;  %v707_v40 = vand.u32 7, %v561_v18 }
  0x19   : > { %v358_v3 = vld [vmem:[%s2275_s26] sm:$0xff]  ;;  %v360_v5 = vld [vmem:[%s345_s16 + $0x8] sm:$0xff]  ;;  %v361_v6 = vld [vmem:[%s345_s16 + $0x10] sm:$0xff]  ;;  %s2156_s21 = smov 8   ;;  %s1876_s22 = sshll.u32 %s2145_s30, 10 }
  0x1a   : > { %1819 = vmatmul.mubr.msk.f32.vlgmr.msra.gmra.mrb[0].mxu0 %vm383_vm1, %v358_v3  ;;  %v359_v4 = vld [vmem:[%s345_s16] sm:$0xff]  ;;  %v362_v7 = vld [vmem:[%s345_s16 + $0x18] sm:$0xff]  ;;  %v364_v9 = vld [vmem:[%s345_s16 + $0x28] sm:$0xff]  ;;  %951 = vrot.lane.b32.xlu1 %v2155_v2, %s2156_s21  ;;  %vm2487_vm14 = vcmp.gt.s32.totalorder %v707_v40, 0  ;;  %s1724_s23 = sshll.u32 %s2798_s20, 4  ;;  %s2825_s30 = scalar_lea.sflag [#allocation3], %s337_s12  ;;  %s2819_s23 = int_to_ptr.vmem [resolvable:$true] %s1724_s23 }
  0x1b   : > { %488 = vmatprep.mubr.f32.mxu0 %v2155_v2  ;;  %v363_v8 = vld [vmem:[%s345_s16 + $0x20] sm:$0xff]  ;;  %v365_v10 = vld [vmem:[%s345_s16 + $0x30] sm:$0xff]  ;;  %v366_v11 = vld [vmem:[%s345_s16 + $0x38] sm:$0xff]  ;;  %s2075_s11 = scalar_lea.vmem %s2819_s23, 1024  ;;  %s2079_s16 = sshll.u32 %s2159_s14, 4  ;;  %s2080_s16 = int_to_ptr.vmem [resolvable:$false] %s2079_s16 }
  0x1c   : > { %v367_v21 = vld [vmem:[%s2275_s26 + $0x8] sm:$0xff]  ;;  %s2158_s26 = smov 4   ;;  %p2076_p13 = scmp.ne.s32.totalorder %s2819_s23, %s2075_s11 }
  0x1d   : > { %1828 = vmatmul.mubr.msk.f32.vlgmr.msra.gmra.mrb[0].mxu1 %vm383_vm1, %v367_v21  ;;  %s2081_s19 = scalar_lea.vmem %s2080_s16, 2048  ;;  %p2082_p2 = scmp.lt.s32.totalorder %s2819_s23, %s2080_s16 }
  0x1e   : > { %1820 = vmatmul.mubr.msk.f32.gmra.mrb[2].mxu0 %vm383_vm1, %v359_v4  ;;  %1983 = vmatpush3.bf16.msk.msra.mxu1 %vm2318_vm3, %v1978_v22  ;;  %p2077_p0 = pnand %p2076_p13, %p2246_p4  ;;  %p2083_p3 = scmp.lt.s32.totalorder %s2081_s19, %s2075_s11 }
  0x1f   : > { %494 = vmatprep.mubr.f32.mxu0 %v2155_v2 }
  0x20   : > { %p2078_p1 = pneg %p2077_p0  ;;  %p2084_p5 = por %p2083_p3, %p2082_p2 }
  0x22   : > { %1821 = vmatmul.mubr.msk.f32.gmra.mrb[4].mxu0 %vm383_vm1, %v360_v5  ;;  %v672_v5 = vand.u32 7, %v2403_v62  ;;  %v902_v62 = vld [vmem:[%s2876_s4] sm:$0xff]  ;;  %p2085_p6 = pnand %p2084_p5, %p2078_p1 }
  0x23   : > { %500 = vmatprep.mubr.f32.mxu0 %v2155_v2 }
  0x24   : > { %vm791_vm11 = vcmp.gt.s32.totalorder %v672_v5, 0 }
  0x26   : > { %1822 = vmatmul.mubr.msk.f32.gmra.mrb[6].mxu0 %vm383_vm1, %v361_v6 }
  0x27   : > { %506 = vmatprep.mubr.f32.mxu0 %v2155_v2 }
  0x2a   : > { %1823 = vmatmul.mubr.msk.f32.gmra.mrb[8].mxu0 %vm383_vm1, %v362_v7 }
  0x2b   : > { %512 = vmatprep.mubr.f32.mxu0 %v2155_v2 }
  0x2e   : > { %1824 = vmatmul.mubr.msk.f32.gmra.mrb[10].mxu0 %vm383_vm1, %v363_v8 }
  0x2f   : > { %518 = vmatprep.mubr.f32.mxu0 %v2155_v2 }
  0x32   : > { %1825 = vmatmul.mubr.msk.f32.gmra.mrb[12].mxu0 %vm383_vm1, %v364_v9 }
  0x33   : > { %524 = vmatprep.mubr.f32.mxu0 %v2155_v2 }
  0x36   : > { %1826 = vmatmul.mubr.msk.f32.gmra.mrb[14].mxu0 %vm383_vm1, %v365_v10 }
  0x37   : > { %530 = vmatprep.mubr.f32.mxu0 %v2155_v2 }
  0x3a   : > { %1827 = vmatmul.mubr.msk.f32.gmra.mrb[16].mxu0 %vm383_vm1, %v366_v11 }
  0xed   : > { %v485_v20 = vpop.f32.mrb[0].mxu0 }
  0xee   : > { %v486_v23 = vpop.f32.mrb[1].mxu0 }
  0xef   : > { %v2448_v23 = vadd.s32 72, %v2298_v13 }
  0xf1   : > { %v490_v29 = vpop.f32.mrb[2].mxu0 }
  0xf2   : > { %v2340_v31 = vadd.f32 %v490_v29, %v2304_v16  ;;  %v492_v32 = vpop.f32.mrb[3].mxu0 }
  0xf3   : > { %v493_v34 = vadd.f32 %v492_v32, %v2323_v26  ;;  %v679_v32 = vand.u32 7, %v2437_v15 }
  0xf5   : > { %v2344_v35 = vmax.f32 %v493_v34, 0.0  ;;  %v496_v36 = vpop.f32.mrb[4].mxu0  ;;  %vm2478_vm13 = vcmp.gt.s32.totalorder %v679_v32, 0 }
  0xf6   : > { %v2350_v38 = vadd.f32 %v496_v36, %v2304_v16  ;;  %v498_v39 = vpop.f32.mrb[5].mxu0 }
  0xf7   : > { %v499_v42 = vadd.f32 %v498_v39, %v2323_v26  ;;  %912 = vrot.lane.b32.xlu0 %v2344_v35, %s2158_s26  ;;  %v768_v43 = vrot.slane %v2344_v35, 7  ;;  %v1246_v44 = vrot.slane %v2344_v35, 1 }
  0xf9   : > { %v2366_v46 = vmax.f32 %v499_v42, 0.0  ;;  %v502_v47 = vpop.f32.mrb[6].mxu0  ;;  %v2371_v48 = vsel %vm1255_vm5, %v2347_v37, %v1246_v44  ;;  %v786_v53 = vsel %vm777_vm7, %v2326_v27, %v768_v43 }
  0xfa   : > { %v2374_v49 = vadd.f32 %v502_v47, %v2304_v16  ;;  %v504_v50 = vpop.f32.mrb[7].mxu0  ;;  %v1296_v51 = vsel %vm2361_vm6, %v2371_v48, 0.0  ;;  %v2394_v60 = vsel %vm789_vm8, %v786_v53, 0.0  ;;  %vm1274_vm8 = vcmp.lt.s32.totalorder %v707_v40, 7 }
  0xfb   : > { %v505_v52 = vadd.f32 %v504_v50, %v2323_v26  ;;  %937 = vrot.lane.b32.xlu1 %v2366_v46, %s2156_s21  ;;  %914 = vrot.lane.b32.xlu0 %v2366_v46, %s2158_s26  ;;  %v769_v55 = vrot.slane %v2366_v46, 7  ;;  %v1247_v4 = vrot.slane %v2366_v46, 1 }
  0xfd   : > { %v2389_v56 = vmax.f32 %v505_v52, 0.0  ;;  %v508_v57 = vpop.f32.mrb[8].mxu0  ;;  %v785_v61 = vsel %vm777_vm7, %v768_v43, %v769_v55  ;;  %v1263_v11 = vsel %vm1255_vm5, %v1246_v44, %v1247_v4  ;;  %v714_v44 = vand.u32 7, %v2448_v23 }
  0xfe   : > { %v2392_v58 = vadd.f32 %v508_v57, %v2304_v16  ;;  %v510_v59 = vpop.f32.mrb[9].mxu0  ;;  %v2409_v3 = vsel %vm790_vm9, %v785_v61, 0.0  ;;  %v2440_v19 = vsel %vm1267_vm10, %v1263_v11, 0.0  ;;  %vm1269_vm9 = vcmp.lt.s32.totalorder %v672_v5, 7  ;;  %v903_v5 = vld [vmem:[%s2876_s4 + $0x8] sm:$0xf] }
  0xff   : > { %939 = vrot.lane.b32.xlu1 %v2389_v56, %s2156_s21  ;;  %836 = vrot.lane.b32.xlu0 %v2394_v60, %s2158_s26  ;;  %v511_v63 = vadd.f32 %v510_v59, %v2323_v26  ;;  %v770_v6 = vrot.slane %v2389_v56, 7  ;;  %v1248_v14 = vrot.slane %v2389_v56, 1  ;;  %vm2494_vm15 = vcmp.gt.s32.totalorder %v714_v44, 0 }
 0x101   : > { %v514_v0 = vpop.f32.mrb[10].mxu0  ;;  %v2418_v7 = vmax.f32 %v511_v63, 0.0  ;;  %v784_v12 = vsel %vm777_vm7, %v769_v55, %v770_v6  ;;  %v1262_v25 = vsel %vm1255_vm5, %v1247_v4, %v1248_v14 }
 0x102   : > { %v2407_v1 = vadd.f32 %v514_v0, %v2304_v16  ;;  %v516_v2 = vpop.f32.mrb[11].mxu0  ;;  %v2442_v20 = vsel %vm791_vm11, %v784_v12, 0.0  ;;  %v2463_v41 = vsel %vm1268_vm12, %v1262_v25, 0.0  ;;  %vm1270_vm12 = vcmp.lt.s32.totalorder %v679_v32, 7 }
 0x103   : > { %916 = vrot.lane.b32.xlu0 %v2389_v56, %s2158_s26  ;;  %838 = vrot.lane.b32.xlu1 %v2409_v3, %s2158_s26  ;;  %v517_v34 = vadd.f32 %v516_v2, %v2323_v26  ;;  %v771_v36 = vrot.slane %v2418_v7, 7  ;;  %v1249_v59 = vrot.slane %v2418_v7, 1 }
 0x105   : > { %v520_v8 = vpop.f32.mrb[12].mxu0  ;;  %v2483_v53 = vmax.f32 %v517_v34, 0.0  ;;  %v783_v54 = vsel %vm777_vm7, %v770_v6, %v771_v36  ;;  %v1261_v34 = vsel %vm1255_vm5, %v1248_v14, %v1249_v59 }
 0x106   : > { %v2421_v9 = vadd.f32 %v520_v8, %v2304_v16  ;;  %v2423_v10 = vpop.f32.mrb[13].mxu0  ;;  %v2508_v6 = vsel %vm2478_vm13, %v783_v54, 0.0  ;;  %v559_v54 = vadd.s32 48, %v2298_v13 }
 0x107   : > { %861 = vrot.lane.b32.xlu0 %v2409_v3, %s2156_s21  ;;  %918 = vrot.lane.b32.xlu1 %v2418_v7, %s2158_s26  ;;  %v523_v40 = vadd.f32 %v2423_v10, %v2323_v26  ;;  %v772_v52 = vrot.slane %v2483_v53, 7 }
 0x108   : > { %v693_v61 = vand.u32 7, %v559_v54 }
 0x109   : > { %v526_v17 = vpop.f32.mrb[14].mxu0  ;;  %v2556_v10 = vmax.f32 %v523_v40, 0.0  ;;  %v782_v14 = vsel %vm777_vm7, %v771_v36, %v772_v52 }
 0x10a   : > { %v2445_v21 = vadd.f32 %v526_v17, %v2304_v16  ;;  %v528_v22 = vpop.f32.mrb[15].mxu0  ;;  %vm794_vm11 = vcmp.gt.s32.totalorder %v693_v61, 0 }
 0x10b   : > { %1314 = vrot.lane.b32.xlu0 %v2440_v19, %s2158_s26  ;;  %863 = vrot.lane.b32.xlu1 %v2442_v20, %s2156_s21  ;;  %v529_v29 = vadd.f32 %v528_v22, %v2323_v26 }
 0x10d   : > { %v532_v39 = vpop.f32.mrb[16].mxu0  ;;  %v2473_v47 = vmax.f32 %v529_v29, 0.0 }
 0x10e   : > { %v2466_v42 = vadd.f32 %v532_v39, %v2304_v16  ;;  %v534_v43 = vpop.f32.mrb[17].mxu0  ;;  %v700_v16 = vand.u32 7, %v2459_v33  ;;  %v558_v39 = vadd.s32 40, %v2298_v13 }
 0x10f   : > { %941 = vrot.lane.b32.xlu0 %v2418_v7, %s2156_s21  ;;  %1316 = vrot.lane.b32.xlu1 %v2463_v41, %s2158_s26  ;;  %v535_v50 = vadd.f32 %v534_v43, %v2323_v26  ;;  %v774_v63 = vrot.slane %v2473_v47, 7  ;;  %v1252_v2 = vrot.slane %v2473_v47, 1  ;;  %v2541_v43 = vsel %vm1269_vm9, %v1261_v34, 0.0 }
 0x110   : > { %vm1273_vm2 = vcmp.lt.s32.totalorder %v700_v16, 7  ;;  %v2554_v26 = vpack.c.bf16 %v903_v5, %v902_v62 }
 0x111   : > { %v550_v55 = vmax.f32 %v535_v50, 0.0  ;;  %v686_v50 = vand.u32 7, %v558_v39 }
 0x112   : > { %1986 = vmatprep.subr.msk.bf16.mxu1 %vm2318_vm3, %v2554_v26 }
 0x113   : > { %840 = vrot.lane.b32.xlu0 %v2442_v20, %s2158_s26  ;;  %943 = vrot.lane.b32.xlu1 %v2483_v53, %s2156_s21  ;;  %v775_v0 = vrot.slane %v550_v55, 7  ;;  %v1253_v4 = vrot.slane %v550_v55, 1  ;;  %vm793_vm10 = vcmp.gt.s32.totalorder %v686_v50, 0  ;;  %vm1271_vm13 = vcmp.lt.s32.totalorder %v686_v50, 7 }
 0x114   : > { %v2568_v57 = vsel %vm793_vm10, %v782_v14, 0.0 }
 0x115   : > { %v779_v8 = vsel %vm777_vm7, %v774_v63, %v775_v0  ;;  %v778_v11 = vsel %vm777_vm7, %v775_v0, %v2326_v27  ;;  %v1257_v12 = vsel %vm1255_vm5, %v1252_v2, %v1253_v4  ;;  %v1256_v17 = vsel %vm1255_vm5, %v1253_v4, %v2347_v37 }
 0x116   : > { %v826_v18 = vsel %vm2487_vm14, %v779_v8, 0.0  ;;  %v827_v22 = vsel %vm2494_vm15, %v778_v11, 0.0  ;;  %v2526_v25 = vsel %vm1273_vm2, %v1257_v12, 0.0  ;;  %v2528_v29 = vsel %vm1274_vm8, %v1256_v17, 0.0 }
 0x117   : > { %1339 = vrot.lane.b32.xlu0 %v2463_v41, %s2156_s21  ;;  %842 = vrot.lane.b32.xlu1 %v2508_v6, %s2158_s26  ;;  %v773_v0 = vrot.slane %v2556_v10, 7  ;;  %v1250_v8 = vrot.slane %v2483_v53, 1  ;;  %v1251_v12 = vrot.slane %v2556_v10, 1  ;;  %vm795_vm14 = vcmp.gt.s32.totalorder %v700_v16, 0 }
 0x118   : > { %vm980_vm15 = vcmask 97280  }
 0x119   : > { %v781_v36 = vsel %vm777_vm7, %v772_v52, %v773_v0  ;;  %v1260_v11 = vsel %vm1255_vm5, %v1249_v59, %v1250_v8  ;;  %v1259_v34 = vsel %vm1255_vm5, %v1250_v8, %v1251_v12  ;;  %v780_v15 = vsel %vm777_vm7, %v773_v0, %v774_v63  ;;  %v2653_v59 = vpop.permute.xlu1 %951 }
 0x11a   : > { %v2581_v4 = vsel %vm794_vm11, %v781_v36, 0.0  ;;  %v2596_v17 = vsel %vm1270_vm12, %v1260_v11, 0.0  ;;  %v2603_v39 = vsel %vm1271_vm13, %v1259_v34, 0.0  ;;  %v2613_v32 = vsel %vm795_vm14, %v780_v15, 0.0 }
 0x11b   : > { %920 = vrot.lane.b32.xlu0 %v2483_v53, %s2158_s26  ;;  %1341 = vrot.lane.b32.xlu1 %v2541_v43, %s2156_s21  ;;  %v1258_v33 = vsel %vm1255_vm5, %v1251_v12, %v1252_v2  ;;  %vm1272_vm7 = vcmp.lt.s32.totalorder %v693_v61, 7  ;;  %vm1275_vm5 = vcmp.lt.s32.totalorder %v714_v44, 7 }
 0x11c   : > { %v2628_v16 = vsel %vm1272_vm7, %v1258_v33, 0.0  ;;  %v1305_v13 = vsel %vm1275_vm5, %v2347_v37, 0.0  ;;  %v1849_v37 = vld [vmem:[%s2876_s4 + $0x20] sm:$0xff] }
 0x11f   : > { %865 = vrot.lane.b32.xlu0 %v2508_v6, %s2156_s21  ;;  %922 = vrot.lane.b32.xlu1 %v2556_v10, %s2158_s26 }
 0x123   : > { %945 = vrot.lane.b32.xlu0 %v2556_v10, %s2156_s21  ;;  %867 = vrot.lane.b32.xlu1 %v2568_v57, %s2156_s21 }
 0x127   : > { %844 = vrot.lane.b32.xlu0 %v2568_v57, %s2158_s26  ;;  %947 = vrot.lane.b32.xlu1 %v2473_v47, %s2156_s21 }
 0x12b   : > { %924 = vrot.lane.b32.xlu0 %v2473_v47, %s2158_s26  ;;  %846 = vrot.lane.b32.xlu1 %v2581_v4, %s2158_s26 }
 0x12f   : > { %869 = vrot.lane.b32.xlu0 %v2581_v4, %s2156_s21  ;;  %926 = vrot.lane.b32.xlu1 %v550_v55, %s2158_s26 }
 0x133   : > { %949 = vrot.lane.b32.xlu0 %v550_v55, %s2156_s21  ;;  %1320 = vrot.lane.b32.xlu1 %v2596_v17, %s2158_s26  ;;  %v1545_v55 = vld [vmem:[%s2878_s6] sm:$0xf] }
 0x134   : > { %1964 = vmatprep.subr.msk.mxu0 %vm414_vm0, %v1545_v55 }
 0x135   : > { %1965 = vmatpush3.msk.msra.mxu0 %vm414_vm0, %v1545_v55  ;;  %vm893_vm0 = vcmask 64512  }
 0x137   : > { %1318 = vrot.lane.b32.xlu0 %v2541_v43, %s2158_s26  ;;  %1345 = vrot.lane.b32.xlu1 %v2603_v39, %s2156_s21 }
 0x13b   : > { %1343 = vrot.lane.b32.xlu0 %v2596_v17, %s2156_s21  ;;  %871 = vrot.lane.b32.xlu1 %v2613_v32, %s2156_s21 }
 0x13f   : > { %848 = vrot.lane.b32.xlu0 %v2613_v32, %s2158_s26  ;;  %850 = vrot.lane.b32.xlu1 %v826_v18, %s2158_s26 }
 0x143   : > { %873 = vrot.lane.b32.xlu0 %v826_v18, %s2156_s21  ;;  %875 = vrot.lane.b32.xlu1 %v827_v22, %s2156_s21  ;;  %v1850_v22 = vld [vmem:[%s2876_s4 + $0x28] sm:$0xf] }
 0x144   : > { %v1990_v52 = vpack.c.bf16 %v1850_v22, %v1849_v37 }
 0x147   : > { %1322 = vrot.lane.b32.xlu0 %v2603_v39, %s2158_s26  ;;  %1324 = vrot.lane.b32.xlu1 %v2628_v16, %s2158_s26 }
 0x14b   : > { %1347 = vrot.lane.b32.xlu0 %v2628_v16, %s2156_s21  ;;  %1349 = vrot.lane.b32.xlu1 %v2526_v25, %s2156_s21 }
 0x14f   : > { %1326 = vrot.lane.b32.xlu0 %v2526_v25, %s2158_s26  ;;  %1328 = vrot.lane.b32.xlu1 %v2528_v29, %s2158_s26  ;;  %s2817_s26 = scalar_lea.hbm %s2880_s8, %s1876_s22 }
 0x153   : > { %1351 = vrot.lane.b32.xlu0 %v2528_v29, %s2156_s21  ;;  %1353 = vrot.lane.b32.xlu1 %v1305_v13, %s2156_s21 }
 0x169   : > { %v913_v63 = vpop.permute.xlu0 %912 }
 0x16a   : > { %v961_v23 = vsel %vm383_vm1, 0.0, %v913_v63 }
 0x16d   : > { %v938_v44 = vpop.permute.xlu1 %937  ;;  %v915_v2 = vpop.permute.xlu0 %914 }
 0x16e   : > { %v969_v18 = vsel %vm893_vm0, %v961_v23, %v938_v44  ;;  %v962_v29 = vsel %vm383_vm1, %v2344_v35, %v915_v2 }
 0x16f   : > { %1920 = vmatprep.mubr.msk.f32.mxu1 %vm980_vm15, %v969_v18 }
 0x171   : > { %v940_v40 = vpop.permute.xlu1 %939  ;;  %v837_v50 = vpop.permute.xlu0 %836 }
 0x172   : > { %v970_v62 = vsel %vm893_vm0, %v962_v29, %v940_v40 }
 0x173   : > { %1921 = vmatmul.mubr.msk.f32.vlgmr.msra.gmra.mrb[2].mxu1 %vm980_vm15, %v970_v62 }
 0x174   : > { %1989 = vmatpush3.bf16.msk.msra.mxu1 %vm2318_vm3, %v2554_v26 }
 0x175   : > { %v917_v5 = vpop.permute.xlu0 %916  ;;  %v839_v14 = vpop.permute.xlu1 %838  ;;  %1992 = vmatprep.subr.msk.bf16.mxu1 %vm2318_vm3, %v1990_v52 }
 0x176   : > { %v963_v36 = vsel %vm383_vm1, %v2366_v46, %v917_v5  ;;  %v886_v28 = vsel %vm383_vm1, %v2394_v60, %v839_v14 }
 0x179   : > { %v862_v54 = vpop.permute.xlu0 %861  ;;  %v919_v61 = vpop.permute.xlu1 %918 }
 0x17a   : > { %v964_v26 = vsel %vm383_vm1, %v2389_v56, %v919_v61 }
 0x17d   : > { %v2673_v0 = vpop.permute.xlu0 %1314  ;;  %v864_v35 = vpop.permute.xlu1 %863 }
 0x17e   : > { %v895_v27 = vsel %vm893_vm0, %v886_v28, %v864_v35 }
 0x181   : > { %v942_v8 = vpop.permute.xlu0 %941  ;;  %v2677_v11 = vpop.permute.xlu1 %1316 }
 0x182   : > { %v971_v12 = vsel %vm893_vm0, %v963_v36, %v942_v8 }
 0x183   : > { %1923 = vmatprep.mubr.msk.f32.mxu1 %vm980_vm15, %v971_v12 }
 0x185   : > { %v841_v34 = vpop.permute.xlu0 %840  ;;  %v944_v15 = vpop.permute.xlu1 %943 }
 0x186   : > { %v972_v33 = vsel %vm893_vm0, %v964_v26, %v944_v15 }
 0x187   : > { %1924 = vmatmul.mubr.msk.f32.gmra.mrb[4].mxu1 %vm980_vm15, %v972_v33  ;;  %v885_v33 = vsel %vm383_vm1, %v818_v30, %v837_v50  ;;  %v887_v30 = vsel %vm383_vm1, %v2409_v3, %v841_v34 }
 0x189   : > { %v1340_v55 = vpop.permute.xlu0 %1339  ;;  %v843_v13 = vpop.permute.xlu1 %842 }
 0x18d   : > { %v921_v63 = vpop.permute.xlu0 %920  ;;  %v2685_v46 = vpop.permute.xlu1 %1341 }
 0x18e   : > { %v965_v2 = vsel %vm383_vm1, %v2418_v7, %v921_v63 }
 0x191   : > { %v866_v23 = vpop.permute.xlu0 %865  ;;  %v923_v44 = vpop.permute.xlu1 %922 }
 0x192   : > { %v966_v22 = vsel %vm383_vm1, %v2483_v53, %v923_v44  ;;  %v896_v50 = vsel %vm893_vm0, %v887_v30, %v866_v23 }
 0x195   : > { %v946_v18 = vpop.permute.xlu0 %945  ;;  %v868_v37 = vpop.permute.xlu1 %867 }
 0x196   : > { %v973_v56 = vsel %vm893_vm0, %v965_v2, %v946_v18  ;;  %v888_v2 = vsel %vm383_vm1, %v2442_v20, %v843_v13 }
 0x197   : > { %1926 = vmatprep.mubr.msk.f32.mxu1 %vm980_vm15, %v973_v56  ;;  %v897_v60 = vsel %vm893_vm0, %v888_v2, %v868_v37 }
 0x199   : > { %v845_v29 = vpop.permute.xlu0 %844  ;;  %v948_v40 = vpop.permute.xlu1 %947 }
 0x19a   : > { %v974_v62 = vsel %vm893_vm0, %v966_v22, %v948_v40  ;;  %v889_v14 = vsel %vm383_vm1, %v2508_v6, %v845_v29  ;;  %v1364_v22 = vsel %vm383_vm1, %v2440_v19, %v2677_v11 }
 0x19b   : > { %1927 = vmatmul.mubr.msk.f32.gmra.mrb[6].mxu1 %vm980_vm15, %v974_v62  ;;  %v1372_v45 = vsel %vm893_vm0, %v1364_v22, %v2685_v46 }
 0x19d   : > { %v925_v5 = vpop.permute.xlu0 %924  ;;  %v847_v61 = vpop.permute.xlu1 %846 }
 0x19e   : > { %v967_v12 = vsel %vm383_vm1, %v2556_v10, %v925_v5  ;;  %v538_v5 = vpop.f32.mrb[0].mxu1 }
 0x1a1   : > { %v870_v36 = vpop.permute.xlu0 %869  ;;  %v927_v8 = vpop.permute.xlu1 %926 }
 0x1a2   : > { %v968_v7 = vsel %vm383_vm1, %v2473_v47, %v927_v8  ;;  %v894_v47 = vsel %vm893_vm0, %v885_v33, %v862_v54  ;;  %v898_v3 = vsel %vm893_vm0, %v889_v14, %v870_v36 }
 0x1a3   : > { %v976_v63 = vsel %vm893_vm0, %v968_v7, %v2653_v59 }
 0x1a5   : > { %v950_v26 = vpop.permute.xlu0 %949  ;;  %v1321_v15 = vpop.permute.xlu1 %1320 }
 0x1a6   : > { %v975_v53 = vsel %vm893_vm0, %v967_v12, %v950_v26  ;;  %v1366_v29 = vsel %vm383_vm1, %v2541_v43, %v1321_v15  ;;  %v539_v43 = vpop.f32.mrb[1].mxu1 }
 0x1a7   : > { %1929 = vmatprep.mubr.msk.f32.mxu1 %vm980_vm15, %v975_v53 }
 0x1a8   : > { %1930 = vmatmul.mubr.msk.f32.gmra.mrb[8].mxu1 %vm980_vm15, %v976_v63 }
 0x1a9   : > { %v1319_v10 = vpop.permute.xlu0 %1318  ;;  %1936 = vmatprep.mubr.msk.f32.mxu1 %vm980_vm15, %v894_v47  ;;  %v1346_v44 = vpop.permute.xlu1 %1345 }
 0x1aa   : > { %v1365_v48 = vsel %vm383_vm1, %v2463_v41, %v1319_v10  ;;  %v1374_v40 = vsel %vm893_vm0, %v1366_v29, %v1346_v44 }
 0x1ac   : > { %1937 = vmatmul.mubr.msk.f32.vlgmr.msra.gmra.mrb[2].mxu1 %vm980_vm15, %v895_v27 }
 0x1ad   : > { %1995 = vmatpush3.bf16.msk.msra.mxu1 %vm2318_vm3, %v1990_v52  ;;  %v1344_v59 = vpop.permute.xlu0 %1343  ;;  %1939 = vmatprep.mubr.msk.f32.mxu1 %vm980_vm15, %v896_v50  ;;  %v872_v54 = vpop.permute.xlu1 %871  ;;  %v890_v52 = vsel %vm383_vm1, %v2568_v57, %v847_v61  ;;  %v1363_v57 = vsel %vm383_vm1, %v1296_v51, %v2673_v0 }
 0x1ae   : > { %v899_v34 = vsel %vm893_vm0, %v890_v52, %v872_v54  ;;  %v1373_v51 = vsel %vm893_vm0, %v1365_v48, %v1344_v59 }
 0x1b0   : > { %1940 = vmatmul.mubr.msk.f32.gmra.mrb[4].mxu1 %vm980_vm15, %v897_v60 }
 0x1b1   : > { %v849_v35 = vpop.permute.xlu0 %848  ;;  %1942 = vmatprep.mubr.msk.f32.mxu1 %vm980_vm15, %v898_v3  ;;  %v851_v24 = vpop.permute.xlu1 %850 }
 0x1b2   : > { %v891_v20 = vsel %vm383_vm1, %v2581_v4, %v849_v35  ;;  %v892_v6 = vsel %vm383_vm1, %v2613_v32, %v851_v24  ;;  %v1371_v4 = vsel %vm893_vm0, %v1363_v57, %v1340_v55 }
 0x1b4   : > { %1943 = vmatmul.mubr.msk.f32.gmra.mrb[6].mxu1 %vm980_vm15, %v899_v34 }
 0x1b5   : > { %v874_v13 = vpop.permute.xlu0 %873  ;;  %v876_v23 = vpop.permute.xlu1 %875 }
 0x1b6   : > { %v900_v18 = vsel %vm893_vm0, %v891_v20, %v874_v13  ;;  %v901_v37 = vsel %vm893_vm0, %v892_v6, %v876_v23  ;;  %v1861_v6 = vld [vmem:[%s2879_s7] ss:$0 sm:$0xff] }
 0x1b7   : > { %1945 = vmatprep.mubr.msk.f32.mxu1 %vm980_vm15, %v900_v18 }
 0x1b8   : > { %1946 = vmatmul.mubr.msk.f32.gmra.mrb[8].mxu1 %vm980_vm15, %v901_v37 }
 0x1b9   : > { %v1323_v32 = vpop.permute.xlu0 %1322  ;;  %1952 = vmatprep.mubr.msk.f32.mxu1 %vm980_vm15, %v1371_v4  ;;  %v1325_v56 = vpop.permute.xlu1 %1324 }
 0x1ba   : > { %v1367_v19 = vsel %vm383_vm1, %v2596_v17, %v1323_v32  ;;  %v1368_v62 = vsel %vm383_vm1, %v2603_v39, %v1325_v56  ;;  %v1860_v39 = vld [vmem:[%s2877_s5] ss:$0 sm:$0xff] }
 0x1bc   : > { %1953 = vmatmul.mubr.msk.f32.vlgmr.msra.gmra.mrb[2].mxu1 %vm980_vm15, %v1372_v45 }
 0x1bd   : > { %v1348_v0 = vpop.permute.xlu0 %1347  ;;  %1955 = vmatprep.mubr.msk.f32.mxu1 %vm980_vm15, %v1373_v51  ;;  %v1350_v55 = vpop.permute.xlu1 %1349 }
 0x1be   : > { %v1375_v11 = vsel %vm893_vm0, %v1367_v19, %v1348_v0  ;;  %v1376_v61 = vsel %vm893_vm0, %v1368_v62, %v1350_v55 }
 0x1c0   : > { %1956 = vmatmul.mubr.msk.f32.gmra.mrb[4].mxu1 %vm980_vm15, %v1374_v40 }
 0x1c1   : > { %v1327_v41 = vpop.permute.xlu0 %1326  ;;  %1958 = vmatprep.mubr.msk.f32.mxu1 %vm980_vm15, %v1375_v11  ;;  %v1329_v46 = vpop.permute.xlu1 %1328 }
 0x1c2   : > { %v1369_v17 = vsel %vm383_vm1, %v2628_v16, %v1327_v41  ;;  %v1370_v36 = vsel %vm383_vm1, %v2526_v25, %v1329_v46 }
 0x1c4   : > { %1959 = vmatmul.mubr.msk.f32.gmra.mrb[6].mxu1 %vm980_vm15, %v1376_v61 }
 0x1c5   : > { %v1352_v8 = vpop.permute.xlu0 %1351  ;;  %v1354_v7 = vpop.permute.xlu1 %1353 }
 0x1c6   : > { %v1377_v12 = vsel %vm893_vm0, %v1369_v17, %v1352_v8  ;;  %v1378_v26 = vsel %vm893_vm0, %v1370_v36, %v1354_v7 }
 0x1c7   : > { %1961 = vmatprep.mubr.msk.f32.mxu1 %vm980_vm15, %v1377_v12 }
 0x1c8   : > { %1962 = vmatmul.mubr.msk.f32.gmra.mrb[8].mxu1 %vm980_vm15, %v1378_v26 }
 0x28f   : > { %v1954_v15 = vpop.f32.mrb[2].mxu1 }
 0x290   : > { %v1530_v53 = vadd.f32 %v1954_v15, %v1860_v39  ;;  %v1475_v16 = vpop.f32.mrb[3].mxu1 }
 0x291   : > { %v1529_v33 = vadd.f32 %v1860_v39, %v1475_v16 }
 0x292   : > { %v1538_v47 = vmax.f32 %v1530_v53, 0.0 }
 0x293   : > { %v1537_v63 = vmax.f32 %v1529_v33, 0.0  ;;  %v1957_v25 = vpop.f32.mrb[4].mxu1 }
 0x294   : > { %v1532_v10 = vadd.f32 %v1957_v25, %v1860_v39  ;;  %v1485_v44 = vpop.f32.mrb[5].mxu1 }
 0x295   : > { %v1531_v28 = vadd.f32 %v1860_v39, %v1485_v44  ;;  %1966 = vmatprep.mubr.msk.f32.mxu0 %vm383_vm1, %v1537_v63 }
 0x296   : > { %1967 = vmatmul.mubr.msk.f32.vlgmr.msra.gmra.mrb[18].mxu0 %vm383_vm1, %v1538_v47  ;;  %v1540_v50 = vmax.f32 %v1532_v10, 0.0 }
 0x297   : > { %v1539_v27 = vmax.f32 %v1531_v28, 0.0  ;;  %v1960_v30 = vpop.f32.mrb[6].mxu1 }
 0x298   : > { %v1534_v59 = vadd.f32 %v1960_v30, %v1860_v39  ;;  %v1495_v54 = vpop.f32.mrb[7].mxu1 }
 0x299   : > { %v1533_v2 = vadd.f32 %v1860_v39, %v1495_v54  ;;  %1969 = vmatprep.mubr.msk.f32.mxu0 %vm383_vm1, %v1539_v27 }
 0x29a   : > { %1970 = vmatmul.mubr.msk.f32.gmra.mrb[20].mxu0 %vm383_vm1, %v1540_v50  ;;  %v1542_v3 = vmax.f32 %v1534_v59, 0.0 }
 0x29b   : > { %v1541_v60 = vmax.f32 %v1533_v2, 0.0  ;;  %v1963_v14 = vpop.f32.mrb[8].mxu1 }
 0x29c   : > { %v1536_v35 = vadd.f32 %v1963_v14, %v1860_v39  ;;  %v1505_v24 = vpop.f32.mrb[9].mxu1 }
 0x29d   : > { %v1535_v52 = vadd.f32 %v1860_v39, %v1505_v24  ;;  %1972 = vmatprep.mubr.msk.f32.mxu0 %vm383_vm1, %v1541_v60 }
 0x29e   : > { %1973 = vmatmul.mubr.msk.f32.gmra.mrb[22].mxu0 %vm383_vm1, %v1542_v3  ;;  %v1544_v20 = vmax.f32 %v1536_v35, 0.0 }
 0x29f   : > { %v1543_v34 = vmax.f32 %v1535_v52, 0.0 }
 0x2a1   : > { %1975 = vmatprep.mubr.msk.f32.mxu0 %vm383_vm1, %v1543_v34 }
 0x2a2   : > { %1976 = vmatmul.mubr.msk.f32.gmra.mrb[24].mxu0 %vm383_vm1, %v1544_v20 }
 0x369   : > { %v1968_v13 = vpop.f32.mrb[18].mxu0 }
 0x36a   : > { %v1652_v23 = vadd.f32 %v1968_v13, %v1861_v6  ;;  %v1646_v18 = vpop.f32.mrb[19].mxu0 }
 0x36b   : > { %v1647_v37 = vadd.f32 %v1861_v6, %v1646_v18 }
 0x36c   : > { %v1686_v57 = vadd.f32 %v1652_v23, %v2350_v38 }
 0x36d   : > { %v1685_v4 = vadd.f32 %v1647_v37, %v2340_v31  ;;  %v1971_v32 = vpop.f32.mrb[20].mxu0 }
 0x36e   : > { %v1694_v56 = vmax.f32 %v1686_v57, 0.0  ;;  %v1662_v22 = vadd.f32 %v1971_v32, %v1861_v6  ;;  %v1656_v45 = vpop.f32.mrb[21].mxu0 }
 0x36f   : > { %v1693_v48 = vmax.f32 %v1685_v4, 0.0  ;;  %v1657_v51 = vadd.f32 %v1861_v6, %v1656_v45 }
 0x370   : > { %1702 = vst [vmem:[%s2798_s20 + $0x8] sm:$0xff] %v1694_v56  ;;  %v1688_v0 = vadd.f32 %v1662_v22, %v2392_v58 }
 0x371   : > { %1701 = vst [vmem:[%s2798_s20] sm:$0xff] %v1693_v48  ;;  %v1687_v38 = vadd.f32 %v1657_v51, %v2374_v49  ;;  %v1974_v55 = vpop.f32.mrb[22].mxu0 }
 0x372   : > { %v1696_v31 = vmax.f32 %v1688_v0, 0.0  ;;  %v1672_v29 = vadd.f32 %v1974_v55, %v1861_v6  ;;  %v1666_v40 = vpop.f32.mrb[23].mxu0 }
 0x373   : > { %v1695_v19 = vmax.f32 %v1687_v38, 0.0  ;;  %v1667_v11 = vadd.f32 %v1861_v6, %v1666_v40 }
 0x374   : > { %1704 = vst [vmem:[%s2798_s20 + $0x18] sm:$0xff] %v1696_v31  ;;  %v1690_v41 = vadd.f32 %v1672_v29, %v2421_v9 }
 0x375   : > { %1703 = vst [vmem:[%s2798_s20 + $0x10] sm:$0xff] %v1695_v19  ;;  %v1689_v46 = vadd.f32 %v1667_v11, %v2407_v1  ;;  %v1977_v58 = vpop.f32.mrb[24].mxu0 }
 0x376   : > { %v1698_v62 = vmax.f32 %v1690_v41, 0.0  ;;  %v1682_v49 = vadd.f32 %v1977_v58, %v1861_v6  ;;  %v1676_v5 = vpop.f32.mrb[25].mxu0 }
 0x377   : > { %v1697_v61 = vmax.f32 %v1689_v46, 0.0  ;;  %v1677_v43 = vadd.f32 %v1861_v6, %v1676_v5 }
 0x378   : > { %1706 = vst [vmem:[%s2798_s20 + $0x28] sm:$0xff] %v1698_v62  ;;  %v1692_v17 = vadd.f32 %v1682_v49, %v2466_v42 }
 0x379   : > { %1705 = vst [vmem:[%s2798_s20 + $0x20] sm:$0xff] %v1697_v61  ;;  %v1691_v9 = vadd.f32 %v1677_v43, %v2445_v21 }
 0x37a   : > { %v1700_v36 = vmax.f32 %v1692_v17, 0.0 }
 0x37b   : > { %v1699_v1 = vmax.f32 %v1691_v9, 0.0 }
 0x37c   : > { %1708 = vst [vmem:[%s2798_s20 + $0x38] sm:$0xff] %v1700_v36 }
 0x37d   : > { %1707 = vst [vmem:[%s2798_s20 + $0x30] sm:$0xff] %v1699_v1 }
 0x37e   : > { %2088 = shalt.err (!%p2085_p6)
}
 0x37f   : > { %s2089_s12 = scalar_lea.hbm %s2817_s26, 1024  ;;  %s2093_s24 = scalar_lea.hbm %s2880_s8, 2048 }
 0x380   : > { %p2090_p7 = scmp.ne.s32.totalorder %s2817_s26, %s2089_s12  ;;  %p2094_p11 = scmp.lt.u32.totalorder %s2817_s26, %s2880_s8 }
 0x381   : > { %p2095_p12 = scmp.lt.u32.totalorder %s2093_s24, %s2089_s12  ;;  %p2097_p0 = scmp.lt.u32.totalorder %s2089_s12, %s2817_s26 }
 0x382   : > { %p2091_p9 = pnand %p2090_p7, %p2246_p4 }
 0x383   : > { %p2096_p13 = por %p2095_p12, %p2094_p11 }
 0x384   : > { %p2092_p10 = pneg %p2091_p9 }
 0x385   : > { %p2098_p1 = por %p2097_p0, %p2096_p13 }
 0x387   : > { %p2099_p2 = pnand %p2098_p1, %p2092_p10 }
 0x389   : > { %2102 = shalt.err (!%p2099_p2)
}
 0x38a   : > { %s2160_s11 = smov 128  }
 0x38b   : > { %2014 = dma.vmem_to_hbm [thread:$0]  (%p2246_p4), %s2819_s23, 1024, %s2817_s26, %s2825_s30, %s2160_s11, %s2160_s11, %s2156_s21  }
 0x38c PF: > { %p2020_p3 = scmp.ge.s32.totalorder %s2153_s10, 2  ;;  %s1739_s16 = sand.u32 1, %s2133_s27  }
 0x38d   : > { %s1740_s19 = scalar_lea.sflag [#allocation3], %s1739_s16 }
 0x38e   : > { %p2017_p5 = pnand %p2020_p3, %p2253_p8 }
 0x390   : > { %2128 = dma.done.wait (!%p2017_p5), %s1740_s19, 1024  }
 0x391   : > { %2130 = vsyncadd (!%p2017_p5), %s1740_s19, 4294966272  ;;  %s21_s10 = sadd.s32 1, %s2153_s10   ;;  %s2895_s27 = smov %s2137_s28 }
 0x392   : > { %p18_p6 = scmp.ge.s32.totalorder %s21_s10, 4   ;;  %s2896_s28 = smov %s2141_s29 }
 0x393   : > { %s2897_s29 = smov %s2259_s18  ;;  %s2898_s30 = smov %s2149_s9 }
 0x394   : > { %s2899_s9 = smov %s2901_s13  ;;  %20 = sbr.rel (!%p18_p6) target bundleno = 4 (0x4), region = 92 }
 0x39b   :  { %1745 = vsyncpa [#allocation3], 1 }
 0x39c   :  { %1747 = vsyncpa [#allocation3 + $0x1], 1 }

</bundles_post_ra>
